<compile_context>
chip_gen: v7x
topology: tpu7x:2x2x1
jax: 0.10.0
libtpu: 0.0.40
codegen_flags: <defaults>
</compile_context>

<pallas_src>
import functools
import math

import jax
import jax.numpy as jnp
import numpy as np
from jax.experimental import pallas as pl
from jax.experimental.pallas import tpu as pltpu


# ------------------------------ Pallas kernel ------------------------------ #

def _t_linear_kernel(x_ref, c_ref, b_ref, o_ref):
    # x_ref: (tp, nd), c_ref: (nd, nd), b_ref: (1, nd), o_ref: (tp, nd)
    acc = jnp.dot(x_ref[...], c_ref[...], preferred_element_type=jnp.float32)
    o_ref[...] = (acc + b_ref[...]).astype(o_ref.dtype)
    # TODO(synk): if the module is built with a non-None activation, fuse it here
    # (this config uses activation=None, so the layer is a pure affine map).


def _round_up(x, m):
    return -(-x // m) * m


def apply_t_layer_flat(x_flat, C, bias_row, *, block_p=4096, out_dtype=None):
    """Hot path: y_flat = x_flat @ C + bias_row on flat (p, n*d) activations.

    x_flat:   (p, n*d)   float32 or bfloat16 (bf16 halves HBM traffic; acc stays f32)
    C:        (n*d, n*d) same dtype as x_flat (weight-only operator, cached)
    bias_row: (1, n*d)   float32
    """
    p, nd = x_flat.shape
    if out_dtype is None:
        out_dtype = x_flat.dtype

    # Sample-tile selection:
    #  * small p: a single grid step (splitting is pure per-step overhead),
    #  * large p: >= 2 steps so the "parallel" grid axis can use both v7x TensorCores,
    #    capped at block_p rows so double-buffered tiles stay far inside scoped VMEM
    #    while each step's DMA stays well above the ~0.35us fixed step cost.
    if p <= min(block_p, 2048):
        tp = p                                   # equals full dim -> (8,128) rule satisfied
    else:
        tp = min(block_p, _round_up(pl.cdiv(p, 2), 8))
    grid = (pl.cdiv(p, tp),)                     # ragged tail handled by masked stores

    cost = pl.CostEstimate(
        flops=2 * p * nd * nd,
        transcendentals=0,
        bytes_accessed=(p * nd * (x_flat.dtype.itemsize + jnp.dtype(out_dtype).itemsize)
                        + C.size * C.dtype.itemsize
                        + bias_row.size * bias_row.dtype.itemsize),
    )

    return pl.pallas_call(
        _t_linear_kernel,
        out_shape=jax.ShapeDtypeStruct((p, nd), out_dtype),
        grid=grid,
        in_specs=[
            pl.BlockSpec((tp, nd), lambda i: (i, 0)),              # x tile, lane-dense
            pl.BlockSpec((nd, nd), lambda i: (0, 0),               # grid-invariant operator
                         pipeline_mode=pl.Buffered(1)),
            pl.BlockSpec((1, nd), lambda i: (0, 0),                # grid-invariant bias
                         pipeline_mode=pl.Buffered(1)),
        ],
        out_specs=pl.BlockSpec((tp, nd), lambda i: (i, 0)),
        compiler_params=pltpu.CompilerParams(
            dimension_semantics=("parallel",),                     # megacore split on v7x
            vmem_limit_bytes=32 * 1024 * 1024,
        ),
        cost_estimate=cost,
    )(x_flat, C, bias_row)


# --------------------- weight-only precompute (cached) ---------------------- #

def _mode3(t, m):
    # out[..., k] = sum_l m[k, l] * t[..., l]
    return jnp.einsum("kl,ijl->ijk", m, t)


def _t_eye(n, m_inv, d):
    # Identity tensor of the M-product: transform-domain slices are I_n, so every
    # diagonal tube is M^{-1} @ ones(d).
    tube = m_inv @ jnp.ones((d,), dtype=m_inv.dtype)
    return jnp.eye(n, dtype=m_inv.dtype)[:, :, None] * tube[None, None, :]


def make_t_antisymmetric_params(weight, bias, M, M_inv=None, gamma=1e-4,
                                dtype=jnp.float32):
    """Weight-only precompute — call once per weight update and cache (C, bias_row).

    C is (n*d, n*d) such that, with x_flat[j, b*d + l] = x[b, j, l]:
        (x_flat @ C)[j, a*d + q] = mprod(A, x, M)[a, j, q],
    where A = W + mtran(W) - gamma * t_eye(n, M)  (sign follows the module source:
    `weight + mtran(weight) - gamma * t_eye`, despite the layer's name).
    """
    n, _, d = weight.shape
    if M_inv is None:
        M_inv = jnp.linalg.inv(M)            # true inverse (orthogonal M -> M.T)
    A = weight + jnp.transpose(weight, (1, 0, 2)) - gamma * _t_eye(n, M_inv, d)
    A_hat = jnp.einsum("kl,abl->abk", M, A)                  # mode-3 transform of A
    # Fold both x-side mode-3 transforms into the operator:
    #   C[b,l,a,q] = sum_k M[k,l] * A_hat[a,b,k] * M_inv[q,k]
    C = jnp.einsum("kl,abk,qk->blaq", M, A_hat, M_inv).reshape(n * d, n * d)
    if bias is None:
        bias_row = jnp.zeros((1, n * d), jnp.float32)
    else:
        bias_row = bias.reshape(1, n * d).astype(jnp.float32)
    return C.astype(dtype), bias_row


# ------------------------- layout helpers / wrapper ------------------------- #

def to_flat(x):
    """(n, p, d) module layout -> (p, n*d) flat layout (network-boundary relayout)."""
    n, p, d = x.shape
    return jnp.transpose(x, (1, 0, 2)).reshape(p, n * d)


def from_flat(y_flat, n, d):
    p = y_flat.shape[0]
    return jnp.transpose(y_flat.reshape(p, n, d), (1, 0, 2))


def t_antisymmetric_forward(x, C, bias_row, **kwargs):
    """Module-layout forward (n, p, d) -> (n, p, d).

    For multi-layer networks prefer chaining apply_t_layer_flat on flat activations:
    the two relayouts here are then paid once at the network boundary, not per layer.
    """
    n, p, d = x.shape
    return from_flat(apply_t_layer_flat(to_flat(x), C, bias_row, **kwargs), n, d)


# ------------------------------- reference ---------------------------------- #

def reference_forward(x, weight, bias, M, M_inv, gamma):
    n, p, d = x.shape
    A = weight + jnp.transpose(weight, (1, 0, 2)) - gamma * _t_eye(n, M_inv, d)
    a_hat = _mode3(A, M)
    x_hat = _mode3(x, M)
    y_hat = jnp.einsum("ijk,jlk->ilk", a_hat, x_hat)        # facewise product
    y = _mode3(y_hat, M_inv)
    return y + bias


# ---------------------------------- main ------------------------------------ #

if __name__ == "__main__":
    # Small correctness shapes (n*d = 128 lanes). Perf tuning (tp, bf16, TC split)
    # should be validated at production sample counts, not these demo sizes.
    n, p, d = 32, 200, 4          # in_features, num_samples, dim3
    gamma = 1e-4

    key = jax.random.PRNGKey(0)
    kw, kb, km, kx = jax.random.split(key, 4)

    # kaiming_uniform_(a=sqrt(5)) on weight (n, n, d): fan_in = n*d,
    # bound = 1/sqrt(fan_in); same bound for the bias init.
    fan_in = n * d
    bound = 1.0 / math.sqrt(fan_in)
    weight = jax.random.uniform(kw, (n, n, d), jnp.float32, -bound, bound)
    bias = jax.random.uniform(kb, (n, 1, d), jnp.float32, -bound, bound)

    # Orthogonal transform matrix M (so M_inv = M.T), deterministic.
    M, _ = jnp.linalg.qr(jax.random.normal(km, (d, d), jnp.float32))
    M_inv = M.T

    x = jax.random.normal(kx, (n, p, d), jnp.float32)
    y_ref = np.asarray(reference_forward(x, weight, bias, M, M_inv, gamma))

    # Weight-only precompute, hoisted out of the per-call forward and cached.
    C, bias_row = make_t_antisymmetric_params(weight, bias, M, M_inv, gamma)

    # (1) Production hot path: flat (p, n*d) activations, f32, single tile.
    x_flat = to_flat(x)                                   # one-time boundary relayout
    apply_f32 = jax.jit(apply_t_layer_flat)
    y_flat = apply_f32(x_flat, C, bias_row)
    jax.block_until_ready(y_flat)
    np.testing.assert_allclose(np.asarray(from_flat(y_flat, n, d)), y_ref,
                               rtol=1e-4, atol=1e-4)

    # (2) Multi-tile path with a ragged tail (grid = cdiv(200, 64) = 4; no pad/slice),
    #     via the module-layout wrapper.
    fwd_tiled = jax.jit(functools.partial(t_antisymmetric_forward, block_p=64))
    y_tiled = fwd_tiled(x, C, bias_row)
    jax.block_until_ready(y_tiled)
    np.testing.assert_allclose(np.asarray(y_tiled), y_ref, rtol=1e-4, atol=1e-4)

    # (3) bf16-stream path (halves dominant HBM traffic on v6e/v7x; f32 accumulate).
    apply_bf16 = jax.jit(functools.partial(apply_t_layer_flat, out_dtype=jnp.bfloat16))
    y_bf16 = apply_bf16(x_flat.astype(jnp.bfloat16), C.astype(jnp.bfloat16), bias_row)
    jax.block_until_ready(y_bf16)
    np.testing.assert_allclose(
        np.asarray(from_flat(y_bf16, n, d)).astype(np.float32), y_ref,
        rtol=5e-2, atol=5e-2)

    print("KERNEL_OK")
</pallas_src>

<mosaic_0001>
module attributes {stable_mosaic.version = 11 : i64} {
  func.func @_t_linear_kernel(%arg0: i32, %arg1: memref<200x128xf32, #tpu.memory_space<vmem>>, %arg2: memref<128x128xf32, #tpu.memory_space<vmem>>, %arg3: memref<1x128xf32, #tpu.memory_space<vmem>>, %arg4: memref<200x128xf32, #tpu.memory_space<vmem>>) attributes {dimension_semantics = [#tpu.dimension_semantics<parallel>], iteration_bounds = array<i64: 1>, scalar_prefetch = 0 : i64, scratch_operands = 0 : i64, tpu.core_type = #tpu.core_type<tc>, window_params = [{transform_indices = @transform_0, window_bounds = array<i64: 200, 128>}, {pipeline_mode = #tpu.pipeline_mode<synchronous>, transform_indices = @transform_1, window_bounds = array<i64: 128, 128>}, {pipeline_mode = #tpu.pipeline_mode<synchronous>, transform_indices = @transform_2, window_bounds = array<i64: 1, 128>}, {transform_indices = @transform_3, window_bounds = array<i64: 200, 128>}]} {
    %c0 = arith.constant 0 : index
    %c0_0 = arith.constant 0 : index
    %0 = vector.load %arg1[%c0, %c0_0] : memref<200x128xf32, #tpu.memory_space<vmem>>, vector<200x128xf32>
    %c0_1 = arith.constant 0 : index
    %c0_2 = arith.constant 0 : index
    %1 = vector.load %arg2[%c0_1, %c0_2] : memref<128x128xf32, #tpu.memory_space<vmem>>, vector<128x128xf32>
    %cst = arith.constant dense<0.000000e+00> : vector<200x128xf32>
    %2 = tpu.matmul %0, %1, %cst {dimension_numbers = #tpu.dot_dimension_numbers<[1], [0], [0], [1], [0, 0, 1, 1], [], []>} : vector<200x128xf32>, vector<128x128xf32>, vector<200x128xf32> -> vector<200x128xf32>
    %c0_3 = arith.constant 0 : index
    %c0_4 = arith.constant 0 : index
    %3 = vector.load %arg3[%c0_3, %c0_4] : memref<1x128xf32, #tpu.memory_space<vmem>>, vector<1x128xf32>
    %4 = vector.broadcast %3 : vector<1x128xf32> to vector<200x128xf32>
    %5 = arith.addf %2, %4 : vector<200x128xf32>
    %c0_5 = arith.constant 0 : index
    %c0_6 = arith.constant 0 : index
    %6 = vector.load %arg4[%c0_5, %c0_6] : memref<200x128xf32, #tpu.memory_space<vmem>>, vector<200x128xf32>
    tpu.vector_store %arg4[%c0_5, %c0_6], %5 {strides = array<i32>} : memref<200x128xf32, #tpu.memory_space<vmem>>, vector<200x128xf32>,
    return
  }
  func.func @transform_0(%arg0: i32) -> (i32, i32) {
    %c0_i32 = arith.constant 0 : i32
    %c0_i32_0 = arith.constant 0 : i32
    return %arg0, %c0_i32 : i32, i32
  }
  func.func @transform_1(%arg0: i32) -> (i32, i32) {
    %c0_i32 = arith.constant 0 : i32
    %c0_i32_0 = arith.constant 0 : i32
    %c0_i32_1 = arith.constant 0 : i32
    return %c0_i32, %c0_i32_0 : i32, i32
  }
  func.func @transform_2(%arg0: i32) -> (i32, i32) {
    %c0_i32 = arith.constant 0 : i32
    %c0_i32_0 = arith.constant 0 : i32
    %c0_i32_1 = arith.constant 0 : i32
    return %c0_i32, %c0_i32_0 : i32, i32
  }
  func.func @transform_3(%arg0: i32) -> (i32, i32) {
    %c0_i32 = arith.constant 0 : i32
    %c0_i32_0 = arith.constant 0 : i32
    return %arg0, %c0_i32 : i32, i32
  }
}

</mosaic_0001>

<bundles_post_ra>
// kernel: apply_t_layer_flat.1
= control target key start
LH: loop header
LB: loop body
LE: loop exit
PB: predicated region body
PF: predicated region fallthrough
CT: control target
= control target key end

     0   :  { %8 = vsyncpa [#allocation3], 0  ;;  %s746_s0 = inlined_call_operand.hbm [shape: f32[200,128], index: 0, kind: input, shape index: {}]   ;;  %s747_s1 = inlined_call_operand.hbm [shape: f32[128,128], index: 1, kind: input, shape index: {}]   ;;  %s748_s2 = inlined_call_operand.vmem [shape: f32[1,128], index: 2, kind: input, shape index: {}]   ;;  %s749_s3 = inlined_call_operand.hbm [shape: f32[200,128], index: 3, kind: output, shape index: {}]  }
   0x1   :  { %9 = vsyncpa [#allocation6], 0 }
   0x2   :  { %10 = vsyncpa [#allocation4], 0  ;;  %s593_s12 = smov [#allocation2]   ;;  %s521_s16 = scalar_lea.hbm %s746_s0, 3200 }
   0x3   :  { %s16_s13 = sshll.u32 %s593_s12, 4  ;;  %p522_p0 = scmp.ne.s32.totalorder %s746_s0, %s521_s16  ;;  %s17_s13 = int_to_ptr.vmem [resolvable:$true] %s16_s13 }
   0x4   :  { %p525_p1 = scmp.lt.u32.totalorder %s521_s16, %s746_s0 }
   0x6   :  { %p527_p2 = pnand %p525_p1, %p522_p0 }
   0x8   :  { %530 = shalt.err (!%p527_p2)
}
   0x9   :  { %s531_s21 = scalar_lea.vmem %s17_s13, 3200  ;;  %p536_p4 = scmp.lt.s32.totalorder %s17_s13, %s17_s13 }
   0xa   :  { %p532_p3 = scmp.ne.s32.totalorder %s17_s13, %s531_s21  ;;  %p537_p5 = scmp.lt.s32.totalorder %s531_s21, %s531_s21 }
   0xc   :  { %p538_p6 = por %p537_p5, %p536_p4 }
   0xe   :  { %p539_p7 = pnand %p538_p6, %p532_p3 }
  0x10   :  { %542 = shalt.err (!%p539_p7)
}
  0x11   :  { %s594_s22 = smov 128   ;;  %s595_s23 = smov 8  }
  0x12   :  { %22 = dma.hbm_to_vmem [thread:$0]  %s746_s0, 3200, %s17_s13, [#allocation3], %s594_s22, %s594_s22, %s595_s23  }
  0x13   :  { %s596_s26 = smov [#allocation5]   ;;  %s543_s30 = scalar_lea.hbm %s747_s1, 2048 }
  0x14   :  { %s28_s27 = sshll.u32 %s596_s26, 4  ;;  %p544_p8 = scmp.ne.s32.totalorder %s747_s1, %s543_s30  ;;  %s29_s27 = int_to_ptr.vmem [resolvable:$true] %s28_s27 }
  0x15   :  { %p547_p9 = scmp.lt.u32.totalorder %s543_s30, %s747_s1 }
  0x17   :  { %p549_p10 = pnand %p547_p9, %p544_p8 }
  0x19   :  { %552 = shalt.err (!%p549_p10)
}
  0x1a   :  { %s553_s8 = scalar_lea.vmem %s29_s27, 2048  ;;  %p558_p12 = scmp.lt.s32.totalorder %s29_s27, %s29_s27 }
  0x1b   :  { %p554_p11 = scmp.ne.s32.totalorder %s29_s27, %s553_s8  ;;  %p559_p13 = scmp.lt.s32.totalorder %s553_s8, %s553_s8 }
  0x1d   :  { %p560_p0 = por %p559_p13, %p558_p12 }
  0x1f   :  { %p561_p1 = pnand %p560_p0, %p554_p11 }
  0x21   :  { %564 = shalt.err (!%p561_p1)
}
  0x22   :  { %34 = dma.hbm_to_vmem [thread:$0]  %s747_s1, 2048, %s29_s27, [#allocation6], %s594_s22, %s594_s22, %s595_s23  }
  0x23   :  { %587 = dma.done.wait [#allocation3], 3200  }
  0x24   :  { %588 = vsyncadd [#allocation3], 4294964096 }
  0x25   :  { %589 = dma.done.wait [#allocation6], 2048  }
  0x26   :  { %590 = vsyncadd [#allocation6], 4294965248  ;;  %v597_v0 = vmov 0.0|0.0   ;;  %vm598_vm0 = vmmov 0   ;;  %v599_v1 = vmov 0.0   ;;  %v68_v2 = vld [vmem:[#allocation5] sm:$0xff] }
  0x27   :  { %473 = vmatprep.subr.bf16.mxu0 %v597_v0  ;;  %497 = vmatprep.subr.bf16.mxu1 %v597_v0  ;;  %v69_v3 = vld [vmem:[#allocation5 + $0x8] sm:$0xff]  ;;  %v70_v4 = vld [vmem:[#allocation5 + $0x10] sm:$0xff]  ;;  %v71_v6 = vld [vmem:[#allocation5 + $0x18] sm:$0xff] }
  0x28   :  { %398 = vmatprep.mubr.msk.f32.mxu0 %vm598_vm0, %v599_v1  ;;  %437 = vmatprep.mubr.msk.f32.mxu1 %vm598_vm0, %v599_v1  ;;  %v474_v5 = vpack.c.bf16 %v69_v3, %v68_v2  ;;  %v477_v7 = vpack.c.bf16 %v71_v6, %v70_v4  ;;  %v72_v8 = vld [vmem:[#allocation5 + $0x20] sm:$0xff]  ;;  %v73_v9 = vld [vmem:[#allocation5 + $0x28] sm:$0xff]  ;;  %v74_v11 = vld [vmem:[#allocation5 + $0x30] sm:$0xff] }
  0x29   :  { %v480_v10 = vpack.c.bf16 %v73_v9, %v72_v8  ;;  %v75_v12 = vld [vmem:[#allocation5 + $0x38] sm:$0xff]  ;;  %v76_v14 = vld [vmem:[#allocation5 + $0x40] sm:$0xff]  ;;  %v77_v15 = vld [vmem:[#allocation5 + $0x48] sm:$0xff] }
  0x2a   :  { %475 = vmatpush3.bf16.msra.mxu0 %v474_v5  ;;  %505 = vmatpush3.bf16.msra.mxu1 %v474_v5  ;;  %v483_v13 = vpack.c.bf16 %v75_v12, %v74_v11  ;;  %v486_v16 = vpack.c.bf16 %v77_v15, %v76_v14  ;;  %v78_v17 = vld [vmem:[#allocation5 + $0x50] sm:$0xff]  ;;  %v79_v18 = vld [vmem:[#allocation5 + $0x58] sm:$0xff]  ;;  %v80_v20 = vld [vmem:[#allocation5 + $0x60] sm:$0xff] }
  0x2b   :  { %476 = vmatprep.subr.bf16.mxu0 %v597_v0  ;;  %498 = vmatprep.subr.bf16.mxu1 %v597_v0  ;;  %v489_v19 = vpack.c.bf16 %v79_v18, %v78_v17  ;;  %v81_v21 = vld [vmem:[#allocation5 + $0x68] sm:$0xff]  ;;  %v82_v23 = vld [vmem:[#allocation5 + $0x70] sm:$0xff]  ;;  %v83_v24 = vld [vmem:[#allocation5 + $0x78] sm:$0xff] }
  0x2c   :  { %v492_v22 = vpack.c.bf16 %v81_v21, %v80_v20  ;;  %v495_v25 = vpack.c.bf16 %v83_v24, %v82_v23  ;;  %v43_v26 = vld [vmem:[#allocation2] sm:$0xff]  ;;  %v56_v27 = vld [vmem:[#allocation2 + $0x68] sm:$0xff]  ;;  %v57_v29 = vld [vmem:[#allocation2 + $0x70] sm:$0xff] }
  0x2d   :  { %v44_v28 = vld [vmem:[#allocation2 + $0x8] sm:$0xff]  ;;  %v45_v30 = vld [vmem:[#allocation2 + $0x10] sm:$0xff]  ;;  %v58_v31 = vld [vmem:[#allocation2 + $0x78] sm:$0xff] }
  0x2e   :  { %478 = vmatpush3.bf16.msra.mxu0 %v477_v7  ;;  %506 = vmatpush3.bf16.msra.mxu1 %v477_v7  ;;  %v46_v32 = vld [vmem:[#allocation2 + $0x18] sm:$0xff]  ;;  %v59_v33 = vld [vmem:[#allocation2 + $0x80] sm:$0xff]  ;;  %v60_v35 = vld [vmem:[#allocation2 + $0x88] sm:$0xff] }
  0x2f   :  { %479 = vmatprep.subr.bf16.mxu0 %v597_v0  ;;  %499 = vmatprep.subr.bf16.mxu1 %v597_v0  ;;  %v47_v34 = vld [vmem:[#allocation2 + $0x20] sm:$0xff]  ;;  %v48_v36 = vld [vmem:[#allocation2 + $0x28] sm:$0xff]  ;;  %v61_v37 = vld [vmem:[#allocation2 + $0x90] sm:$0xff] }
  0x30   :  { %v49_v38 = vld [vmem:[#allocation2 + $0x30] sm:$0xff]  ;;  %v62_v39 = vld [vmem:[#allocation2 + $0x98] sm:$0xff]  ;;  %v63_v41 = vld [vmem:[#allocation2 + $0xa0] sm:$0xff] }
  0x31   :  { %v50_v40 = vld [vmem:[#allocation2 + $0x38] sm:$0xff]  ;;  %v51_v42 = vld [vmem:[#allocation2 + $0x40] sm:$0xff]  ;;  %v64_v43 = vld [vmem:[#allocation2 + $0xa8] sm:$0xff] }
  0x32   :  { %481 = vmatpush3.bf16.msra.mxu0 %v480_v10  ;;  %507 = vmatpush3.bf16.msra.mxu1 %v480_v10  ;;  %v52_v44 = vld [vmem:[#allocation2 + $0x48] sm:$0xff]  ;;  %v65_v45 = vld [vmem:[#allocation2 + $0xb0] sm:$0xff]  ;;  %v66_v47 = vld [vmem:[#allocation2 + $0xb8] sm:$0xff] }
  0x33   :  { %482 = vmatprep.subr.bf16.mxu0 %v597_v0  ;;  %500 = vmatprep.subr.bf16.mxu1 %v597_v0  ;;  %v53_v46 = vld [vmem:[#allocation2 + $0x50] sm:$0xff]  ;;  %v54_v48 = vld [vmem:[#allocation2 + $0x58] sm:$0xff]  ;;  %v67_v49 = vld [vmem:[#allocation2 + $0xc0] sm:$0xff] }
  0x34   :  { %v55_v50 = vld [vmem:[#allocation2 + $0x60] sm:$0xff] }
  0x35   :  { %v704_v51 = vld [vmem:[%s748_s2] ss:$0 sm:$0xff]  ;;  %s600_s2 = smov [#allocation7]  }
  0x36   :  { %484 = vmatpush3.bf16.msra.mxu0 %v483_v13  ;;  %508 = vmatpush3.bf16.msra.mxu1 %v483_v13  ;;  %s311_s11 = sshll.u32 %s600_s2, 4  ;;  %s312_s11 = int_to_ptr.vmem [resolvable:$true] %s311_s11 }
  0x37   :  { %485 = vmatprep.subr.bf16.mxu0 %v597_v0  ;;  %501 = vmatprep.subr.bf16.mxu1 %v597_v0  ;;  %s565_s12 = scalar_lea.vmem %s312_s11, 3200  ;;  %p570_p3 = scmp.lt.s32.totalorder %s312_s11, %s312_s11 }
  0x38   :  { %p566_p2 = scmp.ne.s32.totalorder %s312_s11, %s565_s12  ;;  %p571_p4 = scmp.lt.s32.totalorder %s565_s12, %s565_s12 }
  0x3a   :  { %487 = vmatpush3.bf16.msra.mxu0 %v486_v16  ;;  %509 = vmatpush3.bf16.msra.mxu1 %v486_v16  ;;  %p572_p5 = por %p571_p4, %p570_p3 }
  0x3b   :  { %488 = vmatprep.subr.bf16.mxu0 %v597_v0  ;;  %502 = vmatprep.subr.bf16.mxu1 %v597_v0 }
  0x3c   :  { %p573_p6 = pnand %p572_p5, %p566_p2 }
  0x3e   :  { %490 = vmatpush3.bf16.msra.mxu0 %v489_v19  ;;  %510 = vmatpush3.bf16.msra.mxu1 %v489_v19 }
  0x3f   :  { %491 = vmatprep.subr.bf16.mxu0 %v597_v0  ;;  %503 = vmatprep.subr.bf16.mxu1 %v597_v0 }
  0x42   :  { %493 = vmatpush3.bf16.msra.mxu0 %v492_v22  ;;  %511 = vmatpush3.bf16.msra.mxu1 %v492_v22 }
  0x43   :  { %494 = vmatprep.subr.bf16.mxu0 %v597_v0  ;;  %504 = vmatprep.subr.bf16.mxu1 %v597_v0 }
  0x46   :  { %496 = vmatpush3.bf16.msra.mxu0 %v495_v25  ;;  %512 = vmatpush3.bf16.msra.mxu1 %v495_v25 }
  0x49   :  { %399 = vmatmul.mubr.f32.vlgmr.msra.gmra.mrb[0].mxu0 %v43_v26  ;;  %438 = vmatmul.mubr.f32.vlgmr.msra.gmra.mrb[0].mxu1 %v56_v27 }
  0x4a   :  { %401 = vmatprep.mubr.msk.f32.mxu0 %vm598_vm0, %v599_v1  ;;  %440 = vmatprep.mubr.msk.f32.mxu1 %vm598_vm0, %v599_v1 }
  0x4d   :  { %402 = vmatmul.mubr.f32.gmra.mrb[2].mxu0 %v44_v28  ;;  %441 = vmatmul.mubr.f32.gmra.mrb[2].mxu1 %v57_v29 }
  0x4e   :  { %404 = vmatprep.mubr.msk.f32.mxu0 %vm598_vm0, %v599_v1  ;;  %443 = vmatprep.mubr.msk.f32.mxu1 %vm598_vm0, %v599_v1 }
  0x51   :  { %405 = vmatmul.mubr.f32.gmra.mrb[4].mxu0 %v45_v30  ;;  %444 = vmatmul.mubr.f32.gmra.mrb[4].mxu1 %v58_v31 }
  0x52   :  { %407 = vmatprep.mubr.msk.f32.mxu0 %vm598_vm0, %v599_v1  ;;  %446 = vmatprep.mubr.msk.f32.mxu1 %vm598_vm0, %v599_v1 }
  0x55   :  { %408 = vmatmul.mubr.f32.gmra.mrb[6].mxu0 %v46_v32  ;;  %447 = vmatmul.mubr.f32.gmra.mrb[6].mxu1 %v59_v33 }
  0x56   :  { %410 = vmatprep.mubr.msk.f32.mxu0 %vm598_vm0, %v599_v1  ;;  %449 = vmatprep.mubr.msk.f32.mxu1 %vm598_vm0, %v599_v1 }
  0x59   :  { %411 = vmatmul.mubr.f32.gmra.mrb[8].mxu0 %v47_v34  ;;  %450 = vmatmul.mubr.f32.gmra.mrb[8].mxu1 %v60_v35 }
  0x5a   :  { %413 = vmatprep.mubr.msk.f32.mxu0 %vm598_vm0, %v599_v1  ;;  %452 = vmatprep.mubr.msk.f32.mxu1 %vm598_vm0, %v599_v1 }
  0x5d   :  { %414 = vmatmul.mubr.f32.gmra.mrb[10].mxu0 %v48_v36  ;;  %453 = vmatmul.mubr.f32.gmra.mrb[10].mxu1 %v61_v37 }
  0x5e   :  { %416 = vmatprep.mubr.msk.f32.mxu0 %vm598_vm0, %v599_v1  ;;  %455 = vmatprep.mubr.msk.f32.mxu1 %vm598_vm0, %v599_v1 }
  0x61   :  { %417 = vmatmul.mubr.f32.gmra.mrb[12].mxu0 %v49_v38  ;;  %456 = vmatmul.mubr.f32.gmra.mrb[12].mxu1 %v62_v39 }
  0x62   :  { %419 = vmatprep.mubr.msk.f32.mxu0 %vm598_vm0, %v599_v1  ;;  %458 = vmatprep.mubr.msk.f32.mxu1 %vm598_vm0, %v599_v1 }
  0x65   :  { %420 = vmatmul.mubr.f32.gmra.mrb[14].mxu0 %v50_v40  ;;  %459 = vmatmul.mubr.f32.gmra.mrb[14].mxu1 %v63_v41 }
  0x66   :  { %422 = vmatprep.mubr.msk.f32.mxu0 %vm598_vm0, %v599_v1  ;;  %461 = vmatprep.mubr.msk.f32.mxu1 %vm598_vm0, %v599_v1 }
  0x69   :  { %423 = vmatmul.mubr.f32.gmra.mrb[16].mxu0 %v51_v42  ;;  %462 = vmatmul.mubr.f32.gmra.mrb[16].mxu1 %v64_v43 }
  0x6a   :  { %425 = vmatprep.mubr.msk.f32.mxu0 %vm598_vm0, %v599_v1  ;;  %464 = vmatprep.mubr.msk.f32.mxu1 %vm598_vm0, %v599_v1 }
  0x6d   :  { %426 = vmatmul.mubr.f32.gmra.mrb[18].mxu0 %v52_v44  ;;  %465 = vmatmul.mubr.f32.gmra.mrb[18].mxu1 %v65_v45 }
  0x6e   :  { %428 = vmatprep.mubr.msk.f32.mxu0 %vm598_vm0, %v599_v1  ;;  %467 = vmatprep.mubr.msk.f32.mxu1 %vm598_vm0, %v599_v1 }
  0x71   :  { %429 = vmatmul.mubr.f32.gmra.mrb[20].mxu0 %v53_v46  ;;  %468 = vmatmul.mubr.f32.gmra.mrb[20].mxu1 %v66_v47 }
  0x72   :  { %431 = vmatprep.mubr.msk.f32.mxu0 %vm598_vm0, %v599_v1  ;;  %470 = vmatprep.mubr.msk.f32.mxu1 %vm598_vm0, %v599_v1 }
  0x75   :  { %432 = vmatmul.mubr.f32.gmra.mrb[22].mxu0 %v54_v48  ;;  %471 = vmatmul.mubr.f32.gmra.mrb[22].mxu1 %v67_v49 }
  0x76   :  { %434 = vmatprep.mubr.msk.f32.mxu0 %vm598_vm0, %v599_v1 }
  0x79   :  { %435 = vmatmul.mubr.f32.gmra.mrb[24].mxu0 %v55_v50 }
 0x11c   :  { %v157_v52 = vpop.f32.mrb[0].mxu0  ;;  %v222_v53 = vpop.f32.mrb[0].mxu1 }
 0x11d   :  { %v158_v54 = vadd.f32 %v704_v51, %v157_v52  ;;  %v400_v55 = vpop.f32.mrb[1].mxu0  ;;  %v223_v56 = vadd.f32 %v704_v51, %v222_v53  ;;  %v439_v57 = vpop.f32.mrb[1].mxu1 }
 0x11f   :  { %281 = vst [vmem:[#allocation7] sm:$0xff] %v158_v54  ;;  %294 = vst [vmem:[#allocation7 + $0x68] sm:$0xff] %v223_v56 }
 0x120   :  { %v162_v58 = vpop.f32.mrb[2].mxu0  ;;  %v227_v59 = vpop.f32.mrb[2].mxu1 }
 0x121   :  { %v163_v60 = vadd.f32 %v704_v51, %v162_v58  ;;  %v403_v61 = vpop.f32.mrb[3].mxu0  ;;  %v228_v62 = vadd.f32 %v704_v51, %v227_v59  ;;  %v442_v63 = vpop.f32.mrb[3].mxu1 }
 0x123   :  { %282 = vst [vmem:[#allocation7 + $0x8] sm:$0xff] %v163_v60  ;;  %295 = vst [vmem:[#allocation7 + $0x70] sm:$0xff] %v228_v62 }
 0x124   :  { %v167_v0 = vpop.f32.mrb[4].mxu0  ;;  %v232_v1 = vpop.f32.mrb[4].mxu1 }
 0x125   :  { %v168_v2 = vadd.f32 %v704_v51, %v167_v0  ;;  %v406_v3 = vpop.f32.mrb[5].mxu0  ;;  %v233_v4 = vadd.f32 %v704_v51, %v232_v1  ;;  %v445_v5 = vpop.f32.mrb[5].mxu1 }
 0x127   :  { %283 = vst [vmem:[#allocation7 + $0x10] sm:$0xff] %v168_v2  ;;  %296 = vst [vmem:[#allocation7 + $0x78] sm:$0xff] %v233_v4 }
 0x128   :  { %v172_v6 = vpop.f32.mrb[6].mxu0  ;;  %v237_v7 = vpop.f32.mrb[6].mxu1 }
 0x129   :  { %v173_v8 = vadd.f32 %v704_v51, %v172_v6  ;;  %v409_v9 = vpop.f32.mrb[7].mxu0  ;;  %v238_v10 = vadd.f32 %v704_v51, %v237_v7  ;;  %v448_v11 = vpop.f32.mrb[7].mxu1 }
 0x12b   :  { %284 = vst [vmem:[#allocation7 + $0x18] sm:$0xff] %v173_v8  ;;  %297 = vst [vmem:[#allocation7 + $0x80] sm:$0xff] %v238_v10 }
 0x12c   :  { %v177_v12 = vpop.f32.mrb[8].mxu0  ;;  %v242_v13 = vpop.f32.mrb[8].mxu1 }
 0x12d   :  { %v178_v14 = vadd.f32 %v704_v51, %v177_v12  ;;  %v412_v15 = vpop.f32.mrb[9].mxu0  ;;  %v243_v16 = vadd.f32 %v704_v51, %v242_v13  ;;  %v451_v17 = vpop.f32.mrb[9].mxu1 }
 0x12f   :  { %285 = vst [vmem:[#allocation7 + $0x20] sm:$0xff] %v178_v14  ;;  %298 = vst [vmem:[#allocation7 + $0x88] sm:$0xff] %v243_v16 }
 0x130   :  { %v182_v18 = vpop.f32.mrb[10].mxu0  ;;  %v247_v19 = vpop.f32.mrb[10].mxu1 }
 0x131   :  { %v183_v20 = vadd.f32 %v704_v51, %v182_v18  ;;  %v415_v21 = vpop.f32.mrb[11].mxu0  ;;  %v248_v22 = vadd.f32 %v704_v51, %v247_v19  ;;  %v454_v23 = vpop.f32.mrb[11].mxu1 }
 0x133   :  { %286 = vst [vmem:[#allocation7 + $0x28] sm:$0xff] %v183_v20  ;;  %299 = vst [vmem:[#allocation7 + $0x90] sm:$0xff] %v248_v22 }
 0x134   :  { %v187_v24 = vpop.f32.mrb[12].mxu0  ;;  %v252_v25 = vpop.f32.mrb[12].mxu1 }
 0x135   :  { %v188_v26 = vadd.f32 %v704_v51, %v187_v24  ;;  %v418_v27 = vpop.f32.mrb[13].mxu0  ;;  %v253_v28 = vadd.f32 %v704_v51, %v252_v25  ;;  %v457_v29 = vpop.f32.mrb[13].mxu1 }
 0x137   :  { %287 = vst [vmem:[#allocation7 + $0x30] sm:$0xff] %v188_v26  ;;  %300 = vst [vmem:[#allocation7 + $0x98] sm:$0xff] %v253_v28 }
 0x138   :  { %v192_v30 = vpop.f32.mrb[14].mxu0  ;;  %v257_v31 = vpop.f32.mrb[14].mxu1 }
 0x139   :  { %v193_v32 = vadd.f32 %v704_v51, %v192_v30  ;;  %v421_v33 = vpop.f32.mrb[15].mxu0  ;;  %v258_v34 = vadd.f32 %v704_v51, %v257_v31  ;;  %v460_v35 = vpop.f32.mrb[15].mxu1 }
 0x13b   :  { %288 = vst [vmem:[#allocation7 + $0x38] sm:$0xff] %v193_v32  ;;  %301 = vst [vmem:[#allocation7 + $0xa0] sm:$0xff] %v258_v34 }
 0x13c   :  { %v197_v36 = vpop.f32.mrb[16].mxu0  ;;  %v262_v37 = vpop.f32.mrb[16].mxu1 }
 0x13d   :  { %v198_v38 = vadd.f32 %v704_v51, %v197_v36  ;;  %v424_v39 = vpop.f32.mrb[17].mxu0  ;;  %v263_v40 = vadd.f32 %v704_v51, %v262_v37  ;;  %v463_v41 = vpop.f32.mrb[17].mxu1 }
 0x13f   :  { %289 = vst [vmem:[#allocation7 + $0x40] sm:$0xff] %v198_v38  ;;  %302 = vst [vmem:[#allocation7 + $0xa8] sm:$0xff] %v263_v40 }
 0x140   :  { %v202_v42 = vpop.f32.mrb[18].mxu0  ;;  %v267_v43 = vpop.f32.mrb[18].mxu1 }
 0x141   :  { %v203_v44 = vadd.f32 %v704_v51, %v202_v42  ;;  %v427_v45 = vpop.f32.mrb[19].mxu0  ;;  %v268_v46 = vadd.f32 %v704_v51, %v267_v43  ;;  %v466_v47 = vpop.f32.mrb[19].mxu1 }
 0x143   :  { %290 = vst [vmem:[#allocation7 + $0x48] sm:$0xff] %v203_v44  ;;  %303 = vst [vmem:[#allocation7 + $0xb0] sm:$0xff] %v268_v46 }
 0x144   :  { %v207_v48 = vpop.f32.mrb[20].mxu0  ;;  %v272_v49 = vpop.f32.mrb[20].mxu1 }
 0x145   :  { %v208_v50 = vadd.f32 %v704_v51, %v207_v48  ;;  %v430_v52 = vpop.f32.mrb[21].mxu0  ;;  %v273_v53 = vadd.f32 %v704_v51, %v272_v49  ;;  %v469_v54 = vpop.f32.mrb[21].mxu1 }
 0x147   :  { %291 = vst [vmem:[#allocation7 + $0x50] sm:$0xff] %v208_v50  ;;  %304 = vst [vmem:[#allocation7 + $0xb8] sm:$0xff] %v273_v53 }
 0x148   :  { %v212_v55 = vpop.f32.mrb[22].mxu0  ;;  %v277_v56 = vpop.f32.mrb[22].mxu1 }
 0x149   :  { %v213_v57 = vadd.f32 %v704_v51, %v212_v55  ;;  %v433_v58 = vpop.f32.mrb[23].mxu0  ;;  %v278_v59 = vadd.f32 %v704_v51, %v277_v56  ;;  %v472_v60 = vpop.f32.mrb[23].mxu1 }
 0x14b   :  { %292 = vst [vmem:[#allocation7 + $0x58] sm:$0xff] %v213_v57  ;;  %305 = vst [vmem:[#allocation7 + $0xc0] sm:$0xff] %v278_v59 }
 0x14c   :  { %v217_v61 = vpop.f32.mrb[24].mxu0 }
 0x14d   :  { %v218_v62 = vadd.f32 %v704_v51, %v217_v61  ;;  %v436_v63 = vpop.f32.mrb[25].mxu0 }
 0x14f   :  { %293 = vst [vmem:[#allocation7 + $0x60] sm:$0xff] %v218_v62 }
 0x150   :  { %576 = shalt.err (!%p573_p6)
}
 0x151   :  { %s577_s15 = scalar_lea.hbm %s749_s3, 3200 }
 0x152   :  { %p578_p7 = scmp.ne.s32.totalorder %s749_s3, %s577_s15  ;;  %p581_p8 = scmp.lt.u32.totalorder %s577_s15, %s749_s3 }
 0x154   :  { %p583_p9 = pnand %p581_p8, %p578_p7 }
 0x156   :  { %586 = shalt.err (!%p583_p9)
}
 0x157   :  { %317 = dma.vmem_to_hbm [thread:$0]  %s312_s11, 3200, %s749_s3, [#allocation4], %s594_s22, %s594_s22, %s595_s23  }
 0x158   :  { %591 = dma.done.wait [#allocation4], 3200  }
 0x159   :  { %592 = vsyncadd [#allocation4], 4294964096 }
 0x15a   :  { %321 = vsyncpa [#allocation3], 1 }
 0x15b   :  { %322 = vsyncpa [#allocation6], 1 }
 0x15c   :  { %323 = vsyncpa [#allocation4], 1 }

</bundles_post_ra>
